<compile_context>
chip_gen: v7x
topology: tpu7x:2x2x1
jax: 0.10.0
libtpu: 0.0.40
codegen_flags: <defaults>
</compile_context>

<pallas_src>
import functools
import math

import jax
import jax.numpy as jnp
from jax.experimental import pallas as pl
from jax.experimental.pallas import tpu as pltpu


def bias_init_with_prob(prior_prob: float) -> float:
    # Same formula used by the PyTorch helper.
    return float(-math.log((1.0 - prior_prob) / prior_prob))


def _round_up(x: int, m: int) -> int:
    return ((x + m - 1) // m) * m


def _detr_head_kernel(c_pad, box_blk, out_w, hs_ref, wf_ref, bf_ref,
                      w2_ref, b2_ref, w3_ref, b3_ref, out_ref):
    """One (decoder_layer, row_tile) grid step.

    hs_ref : (tm, H)           activation rows (native dtype; cast in-kernel)
    wf_ref : (H, c_pad + H)    [class_w_padded | mlp_w1] fused (bf16)
    bf_ref : (1, c_pad + H)    [class_b_padded | mlp_b1] fused (f32)
    w2_ref : (H, H), b2_ref: (1, H)
    w3_ref : (H, 128), b3_ref: (1, 128)   box cols placed at their target lanes
    out_ref: (tm, out_w)       packed [logits | raw boxes] slab (bf16)
    """
    mxu_dtype = wf_ref.dtype
    h = hs_ref[...].astype(mxu_dtype)              # VPU cast, non-binding slot

    # Fused MXU matmul: class logits and bbox-MLP layer 1 share the LHS.
    y = jnp.dot(h, wf_ref[...], preferred_element_type=jnp.float32) + bf_ref[...]
    logits = y[:, :c_pad]                          # (tm, c_pad) f32; padded lanes exact 0
    x = jnp.maximum(y[:, c_pad:], 0.0)             # (tm, H) f32

    x = jnp.dot(x.astype(mxu_dtype), w2_ref[...],
                preferred_element_type=jnp.float32) + b2_ref[...]
    x = jnp.maximum(x, 0.0)
    coord = jnp.dot(x.astype(mxu_dtype), w3_ref[...],
                    preferred_element_type=jnp.float32) + b3_ref[...]
    # coord: (tm, 128) f32, non-zero only on its 4 target box lanes (padded
    # weight columns / bias lanes are exact zeros).

    if out_w == c_pad:
        # Lane-pack the 4 box values into spare (zero) logit lanes of the
        # 128-lane block starting at box_blk; everything is static slicing.
        pieces = []
        if box_blk > 0:
            pieces.append(logits[:, :box_blk])
        pieces.append(logits[:, box_blk:box_blk + 128] + coord)
        if box_blk + 128 < c_pad:
            pieces.append(logits[:, box_blk + 128:])
        packed = pieces[0] if len(pieces) == 1 else jnp.concatenate(pieces, axis=1)
    else:
        # Fallback (num_classes is a multiple of 128): extra 128-lane box block.
        packed = jnp.concatenate([logits, coord], axis=1)

    # Single unmasked, lane-dense bf16 store.
    out_ref[...] = packed.astype(out_ref.dtype)


def pack_detr_head_params(params, *, mxu_dtype=jnp.bfloat16):
    """One-time parameter packing: pad to 128 lanes, fuse class+MLP1, bf16 cast.

    Hoisted out of the per-call hot path — call once, reuse every forward.
    """
    H, C = params["class_w"].shape
    C_pad = _round_up(C, 128)
    BOX_W = 128

    if C_pad - C >= 4:
        box_off = C              # boxes live in the spare logit lanes C..C+3
        out_w = C_pad
    else:
        box_off = C_pad          # fallback: append a dedicated 128-lane block
        out_w = C_pad + BOX_W
    box_blk = (box_off // BOX_W) * BOX_W
    off_in_blk = box_off - box_blk
    assert off_in_blk + 4 <= BOX_W

    wc_p = jnp.zeros((H, C_pad), jnp.float32).at[:, :C].set(params["class_w"])
    bc_p = jnp.zeros((1, C_pad), jnp.float32).at[:, :C].set(params["class_b"])
    w_fused = jnp.concatenate([wc_p, params["mlp_w1"]], axis=1).astype(mxu_dtype)
    b_fused = jnp.concatenate([bc_p, params["mlp_b1"]], axis=1)          # f32
    w3_p = (jnp.zeros((H, BOX_W), jnp.float32)
            .at[:, off_in_blk:off_in_blk + 4].set(params["mlp_w3"])).astype(mxu_dtype)
    b3_p = (jnp.zeros((1, BOX_W), jnp.float32)
            .at[:, off_in_blk:off_in_blk + 4].set(params["mlp_b3"]))

    return {
        "w_fused": w_fused, "b_fused": b_fused,
        "w2": params["mlp_w2"].astype(mxu_dtype), "b2": params["mlp_b2"],
        "w3": w3_p, "b3": b3_p,
        "hidden_dim": H, "num_classes": C,
        "c_pad": C_pad, "box_off": box_off, "box_blk": box_blk, "out_w": out_w,
    }


def detr_head_forward(hs, points, packed_params, *, tm=512):
    """hs: (L, B, Q, H) any float dtype; points: (B, Q, 2)."""
    L, B, Q, H = hs.shape
    pp = packed_params
    assert pp["hidden_dim"] == H
    C, C_pad = pp["num_classes"], pp["c_pad"]
    box_off, box_blk, out_w = pp["box_off"], pp["box_blk"], pp["out_w"]
    BQ = B * Q

    # Row tile: large (amortize per-step overhead / feed the MXU), capped at
    # the padded B*Q extent; multiple of 16 for bf16-output sublane packing.
    tm = max(16, min(tm, _round_up(BQ, 16)))
    BQ_pad = _round_up(BQ, tm)
    n_row_tiles = BQ_pad // tm

    hs3 = hs.reshape(L, BQ, H)                      # contiguous reshape, no copy
    if BQ_pad != BQ:
        hs3 = jnp.pad(hs3, ((0, 0), (0, BQ_pad - BQ), (0, 0)))

    full = lambda l, j: (0, 0)

    grid_spec = pltpu.PrefetchScalarGridSpec(
        num_scalar_prefetch=0,
        grid=(L, n_row_tiles),
        in_specs=[
            pl.BlockSpec((None, tm, H), lambda l, j: (l, j, 0)),   # hs rows
            pl.BlockSpec((H, C_pad + H), full),                    # fused W
            pl.BlockSpec((1, C_pad + H), full),                    # fused b
            pl.BlockSpec((H, H), full),                            # W2
            pl.BlockSpec((1, H), full),                            # b2
            pl.BlockSpec((H, 128), full),                          # W3 (padded)
            pl.BlockSpec((1, 128), full),                          # b3 (padded)
        ],
        out_specs=pl.BlockSpec((None, tm, out_w), lambda l, j: (l, j, 0)),
    )

    packed = pl.pallas_call(
        functools.partial(_detr_head_kernel, C_pad, box_blk, out_w),
        out_shape=jax.ShapeDtypeStruct((L, BQ_pad, out_w), jnp.bfloat16),
        grid_spec=grid_spec,
        compiler_params=pltpu.CompilerParams(
            dimension_semantics=("parallel", "parallel")),
    )(hs3, pp["w_fused"], pp["b_fused"], pp["w2"], pp["b2"], pp["w3"], pp["b3"])

    # Slice logits / raw boxes out of the packed slab; finish the tiny epilogue
    # (points add + sigmoid on (L,B,Q,4)) in the wrapper.
    outputs_class = packed[:, :BQ, :C].astype(jnp.float32).reshape(L, B, Q, C)
    coord = packed[:, :BQ, box_off:box_off + 4].astype(jnp.float32).reshape(L, B, Q, 4)
    coord = coord.at[..., :2].add(points[None].astype(jnp.float32))
    outputs_coord = jax.nn.sigmoid(coord)

    out = {
        "pred_logits": outputs_class[-1],
        "pred_boxes": outputs_coord[-1],
        # aux_loss outputs (all but the last decoder layer)
        "aux_outputs": [
            {"pred_logits": outputs_class[i], "pred_boxes": outputs_coord[i]}
            for i in range(L - 1)
        ],
    }
    return out, outputs_class, outputs_coord


def _reference(hs, points, params, mxu_dtype=jnp.bfloat16, out_dtype=jnp.bfloat16):
    """Pure-JAX reference mirroring the kernel's mixed-precision path."""
    f32 = jnp.float32
    h = hs.astype(mxu_dtype)
    wc = params["class_w"].astype(mxu_dtype)
    w1 = params["mlp_w1"].astype(mxu_dtype)
    w2 = params["mlp_w2"].astype(mxu_dtype)
    w3 = params["mlp_w3"].astype(mxu_dtype)

    logits = jnp.dot(h, wc, preferred_element_type=f32) + params["class_b"][0]
    x = jax.nn.relu(jnp.dot(h, w1, preferred_element_type=f32) + params["mlp_b1"][0])
    x = jax.nn.relu(jnp.dot(x.astype(mxu_dtype), w2, preferred_element_type=f32)
                    + params["mlp_b2"][0])
    coord = (jnp.dot(x.astype(mxu_dtype), w3, preferred_element_type=f32)
             + params["mlp_b3"][0])
    # mimic the kernel's bf16 writeback, then the wrapper-side epilogue
    logits = logits.astype(out_dtype).astype(f32)
    coord = coord.astype(out_dtype).astype(f32)
    coord = coord.at[..., :2].add(points[None].astype(f32))
    return logits, jax.nn.sigmoid(coord)


def make_params(key, hidden_dim, num_classes):
    ks = jax.random.split(key, 5)
    s = 1.0 / math.sqrt(hidden_dim)
    return {
        "class_w": jax.random.uniform(ks[0], (hidden_dim, num_classes),
                                      jnp.float32, -s, s),
        # nn.init.constant_(class_embed.bias, bias_init_with_prob(0.01))
        "class_b": jnp.full((1, num_classes), bias_init_with_prob(0.01),
                            jnp.float32),
        "mlp_w1": jax.random.uniform(ks[1], (hidden_dim, hidden_dim),
                                     jnp.float32, -s, s),
        "mlp_b1": jnp.zeros((1, hidden_dim), jnp.float32),
        "mlp_w2": jax.random.uniform(ks[2], (hidden_dim, hidden_dim),
                                     jnp.float32, -s, s),
        "mlp_b2": jnp.zeros((1, hidden_dim), jnp.float32),
        "mlp_w3": jax.random.uniform(ks[3], (hidden_dim, 4),
                                     jnp.float32, -s, s),
        "mlp_b3": jnp.zeros((1, 4), jnp.float32),
    }


if __name__ == "__main__":
    key = jax.random.PRNGKey(0)
    num_decoder, batch, num_queries, hidden_dim, num_classes = 2, 2, 64, 128, 80

    k_hs, k_pts, k_par = jax.random.split(key, 3)
    hs = jax.random.normal(k_hs, (num_decoder, batch, num_queries, hidden_dim),
                           jnp.float32)
    # reference points from the transformer, in [0, 1)
    points = jax.random.uniform(k_pts, (batch, num_queries, 2), jnp.float32)
    params = make_params(k_par, hidden_dim, num_classes)

    # One-time packing (hoisted off the hot path).
    packed_params = pack_detr_head_params(params)

    out, outputs_class, outputs_coord = detr_head_forward(hs, points, packed_params)
    jax.block_until_ready(out["pred_logits"])
    jax.block_until_ready(out["pred_boxes"])

    ref_logits, ref_boxes = _reference(hs, points, params)
    # bf16 writeback + possible MXU accumulation-order differences -> allow ~1 bf16 ulp.
    assert jnp.allclose(outputs_class, ref_logits, atol=5e-2, rtol=3e-2), (
        float(jnp.max(jnp.abs(outputs_class - ref_logits))))
    assert jnp.allclose(outputs_coord, ref_boxes, atol=1e-2, rtol=1e-2), (
        float(jnp.max(jnp.abs(outputs_coord - ref_boxes))))
    assert out["pred_logits"].shape == (batch, num_queries, num_classes)
    assert out["pred_boxes"].shape == (batch, num_queries, 4)
    assert len(out["aux_outputs"]) == num_decoder - 1
    assert bool(jnp.all((out["pred_boxes"] >= 0.0) & (out["pred_boxes"] <= 1.0)))

    print("KERNEL_OK")
</pallas_src>

<mosaic_0001>
module attributes {stable_mosaic.version = 11 : i64} {
  func.func @_detr_head_kernel(%arg0: i32, %arg1: i32, %arg2: memref<1x128x128xf32, #tpu.memory_space<vmem>>, %arg3: memref<128x256xbf16, #tpu.memory_space<vmem>>, %arg4: memref<1x256xf32, #tpu.memory_space<vmem>>, %arg5: memref<128x128xbf16, #tpu.memory_space<vmem>>, %arg6: memref<1x128xf32, #tpu.memory_space<vmem>>, %arg7: memref<128x128xbf16, #tpu.memory_space<vmem>>, %arg8: memref<1x128xf32, #tpu.memory_space<vmem>>, %arg9: memref<1x128x128xbf16, #tpu.memory_space<vmem>>) attributes {dimension_semantics = [#tpu.dimension_semantics<parallel>, #tpu.dimension_semantics<parallel>], iteration_bounds = array<i64: 2, 1>, scalar_prefetch = 0 : i64, scratch_operands = 0 : i64, tpu.core_type = #tpu.core_type<tc>, window_params = [{transform_indices = @transform_0, window_bounds = array<i64: 1, 128, 128>}, {pipeline_mode = #tpu.pipeline_mode<synchronous>, transform_indices = @transform_1, window_bounds = array<i64: 128, 256>}, {pipeline_mode = #tpu.pipeline_mode<synchronous>, transform_indices = @transform_2, window_bounds = array<i64: 1, 256>}, {pipeline_mode = #tpu.pipeline_mode<synchronous>, transform_indices = @transform_3, window_bounds = array<i64: 128, 128>}, {pipeline_mode = #tpu.pipeline_mode<synchronous>, transform_indices = @transform_4, window_bounds = array<i64: 1, 128>}, {pipeline_mode = #tpu.pipeline_mode<synchronous>, transform_indices = @transform_5, window_bounds = array<i64: 128, 128>}, {pipeline_mode = #tpu.pipeline_mode<synchronous>, transform_indices = @transform_6, window_bounds = array<i64: 1, 128>}, {transform_indices = @transform_7, window_bounds = array<i64: 1, 128, 128>}]} {
    %c0 = arith.constant 0 : index
    %c0_0 = arith.constant 0 : index
    %c0_1 = arith.constant 0 : index
    %0 = vector.load %arg2[%c0, %c0_0, %c0_1] : memref<1x128x128xf32, #tpu.memory_space<vmem>>, vector<1x128x128xf32>
    %1 = vector.shape_cast %0 : vector<1x128x128xf32> to vector<128x128xf32>
    %2 = arith.truncf %1 : vector<128x128xf32> to vector<128x128xbf16>
    %c0_2 = arith.constant 0 : index
    %c0_3 = arith.constant 0 : index
    %3 = vector.load %arg3[%c0_2, %c0_3] : memref<128x256xbf16, #tpu.memory_space<vmem>>, vector<128x256xbf16>
    %cst = arith.constant dense<0.000000e+00> : vector<128x256xf32>
    %4 = tpu.matmul %2, %3, %cst {dimension_numbers = #tpu.dot_dimension_numbers<[1], [0], [0], [1], [0, 0, 1, 1], [], []>} : vector<128x128xbf16>, vector<128x256xbf16>, vector<128x256xf32> -> vector<128x256xf32>
    %c0_4 = arith.constant 0 : index
    %c0_5 = arith.constant 0 : index
    %5 = vector.load %arg4[%c0_4, %c0_5] : memref<1x256xf32, #tpu.memory_space<vmem>>, vector<1x256xf32>
    %6 = vector.broadcast %5 : vector<1x256xf32> to vector<128x256xf32>
    %7 = arith.addf %4, %6 : vector<128x256xf32>
    %8 = vector.extract_strided_slice %7 {offsets = [0, 0], sizes = [128, 128], strides = [1, 1]} : vector<128x256xf32> to vector<128x128xf32>
    %9 = vector.extract_strided_slice %7 {offsets = [0, 128], sizes = [128, 128], strides = [1, 1]} : vector<128x256xf32> to vector<128x128xf32>
    %cst_6 = arith.constant 0.000000e+00 : f32
    %10 = vector.broadcast %cst_6 : f32 to vector<128x128xf32>
    %11 = arith.maximumf %9, %10 : vector<128x128xf32>
    %12 = arith.truncf %11 : vector<128x128xf32> to vector<128x128xbf16>
    %c0_7 = arith.constant 0 : index
    %c0_8 = arith.constant 0 : index
    %13 = vector.load %arg5[%c0_7, %c0_8] : memref<128x128xbf16, #tpu.memory_space<vmem>>, vector<128x128xbf16>
    %cst_9 = arith.constant dense<0.000000e+00> : vector<128x128xf32>
    %14 = tpu.matmul %12, %13, %cst_9 {dimension_numbers = #tpu.dot_dimension_numbers<[1], [0], [0], [1], [0, 0, 1, 1], [], []>} : vector<128x128xbf16>, vector<128x128xbf16>, vector<128x128xf32> -> vector<128x128xf32>
    %c0_10 = arith.constant 0 : index
    %c0_11 = arith.constant 0 : index
    %15 = vector.load %arg6[%c0_10, %c0_11] : memref<1x128xf32, #tpu.memory_space<vmem>>, vector<1x128xf32>
    %16 = vector.broadcast %15 : vector<1x128xf32> to vector<128x128xf32>
    %17 = arith.addf %14, %16 : vector<128x128xf32>
    %cst_12 = arith.constant 0.000000e+00 : f32
    %18 = vector.broadcast %cst_12 : f32 to vector<128x128xf32>
    %19 = arith.maximumf %17, %18 : vector<128x128xf32>
    %20 = arith.truncf %19 : vector<128x128xf32> to vector<128x128xbf16>
    %c0_13 = arith.constant 0 : index
    %c0_14 = arith.constant 0 : index
    %21 = vector.load %arg7[%c0_13, %c0_14] : memref<128x128xbf16, #tpu.memory_space<vmem>>, vector<128x128xbf16>
    %cst_15 = arith.constant dense<0.000000e+00> : vector<128x128xf32>
    %22 = tpu.matmul %20, %21, %cst_15 {dimension_numbers = #tpu.dot_dimension_numbers<[1], [0], [0], [1], [0, 0, 1, 1], [], []>} : vector<128x128xbf16>, vector<128x128xbf16>, vector<128x128xf32> -> vector<128x128xf32>
    %c0_16 = arith.constant 0 : index
    %c0_17 = arith.constant 0 : index
    %23 = vector.load %arg8[%c0_16, %c0_17] : memref<1x128xf32, #tpu.memory_space<vmem>>, vector<1x128xf32>
    %24 = vector.broadcast %23 : vector<1x128xf32> to vector<128x128xf32>
    %25 = arith.addf %22, %24 : vector<128x128xf32>
    %26 = arith.addf %8, %25 : vector<128x128xf32>
    %27 = arith.truncf %26 : vector<128x128xf32> to vector<128x128xbf16>
    %c0_18 = arith.constant 0 : index
    %c0_19 = arith.constant 0 : index
    %c0_20 = arith.constant 0 : index
    %28 = vector.load %arg9[%c0_18, %c0_19, %c0_20] : memref<1x128x128xbf16, #tpu.memory_space<vmem>>, vector<1x128x128xbf16>
    %29 = vector.shape_cast %28 : vector<1x128x128xbf16> to vector<128x128xbf16>
    %30 = vector.shape_cast %27 : vector<128x128xbf16> to vector<1x128x128xbf16>
    tpu.vector_store %arg9[%c0_18, %c0_19, %c0_20], %30 {strides = array<i32>} : memref<1x128x128xbf16, #tpu.memory_space<vmem>>, vector<1x128x128xbf16>,
    return
  }
  func.func @transform_0(%arg0: i32, %arg1: i32) -> (i32, i32, i32) {
    %c0_i32 = arith.constant 0 : i32
    %c0_i32_0 = arith.constant 0 : i32
    return %arg0, %arg1, %c0_i32 : i32, i32, i32
  }
  func.func @transform_1(%arg0: i32, %arg1: i32) -> (i32, i32) {
    %c0_i32 = arith.constant 0 : i32
    %c0_i32_0 = arith.constant 0 : i32
    %c0_i32_1 = arith.constant 0 : i32
    return %c0_i32, %c0_i32_0 : i32, i32
  }
  func.func @transform_2(%arg0: i32, %arg1: i32) -> (i32, i32) {
    %c0_i32 = arith.constant 0 : i32
    %c0_i32_0 = arith.constant 0 : i32
    %c0_i32_1 = arith.constant 0 : i32
    return %c0_i32, %c0_i32_0 : i32, i32
  }
  func.func @transform_3(%arg0: i32, %arg1: i32) -> (i32, i32) {
    %c0_i32 = arith.constant 0 : i32
    %c0_i32_0 = arith.constant 0 : i32
    %c0_i32_1 = arith.constant 0 : i32
    return %c0_i32, %c0_i32_0 : i32, i32
  }
  func.func @transform_4(%arg0: i32, %arg1: i32) -> (i32, i32) {
    %c0_i32 = arith.constant 0 : i32
    %c0_i32_0 = arith.constant 0 : i32
    %c0_i32_1 = arith.constant 0 : i32
    return %c0_i32, %c0_i32_0 : i32, i32
  }
  func.func @transform_5(%arg0: i32, %arg1: i32) -> (i32, i32) {
    %c0_i32 = arith.constant 0 : i32
    %c0_i32_0 = arith.constant 0 : i32
    %c0_i32_1 = arith.constant 0 : i32
    return %c0_i32, %c0_i32_0 : i32, i32
  }
  func.func @transform_6(%arg0: i32, %arg1: i32) -> (i32, i32) {
    %c0_i32 = arith.constant 0 : i32
    %c0_i32_0 = arith.constant 0 : i32
    %c0_i32_1 = arith.constant 0 : i32
    return %c0_i32, %c0_i32_0 : i32, i32
  }
  func.func @transform_7(%arg0: i32, %arg1: i32) -> (i32, i32, i32) {
    %c0_i32 = arith.constant 0 : i32
    %c0_i32_0 = arith.constant 0 : i32
    return %arg0, %arg1, %c0_i32 : i32, i32, i32
  }
}

</mosaic_0001>

<bundles_post_ra>
// kernel: tpu_custom_call.1
= control target key start
LH: loop header
LB: loop body
LE: loop exit
PB: predicated region body
PF: predicated region fallthrough
CT: control target
= control target key end

     0   :  { %s2293_s0 = inlined_call_operand.hbm [shape: f32[2,128,128], index: 0, kind: input, shape index: {}]   ;;  %s2294_s1 = inlined_call_operand.hbm [shape: bf16[128,256], index: 1, kind: input, shape index: {}]   ;;  %s2295_s2 = inlined_call_operand.vmem [shape: f32[1,256], index: 2, kind: input, shape index: {}]   ;;  %s2296_s3 = inlined_call_operand.hbm [shape: bf16[128,128], index: 3, kind: input, shape index: {}]   ;;  %s2297_s4 = inlined_call_operand.vmem [shape: f32[1,128], index: 4, kind: input, shape index: {}]   ;;  %s2298_s5 = inlined_call_operand.hbm [shape: bf16[128,128], index: 5, kind: input, shape index: {}]   ;;  %s2299_s6 = inlined_call_operand.vmem [shape: f32[1,128], index: 6, kind: input, shape index: {}]   ;;  %s2300_s7 = inlined_call_operand.hbm [shape: bf16[2,128,128], index: 7, kind: output, shape index: {}]  }
   0x1   :  { %2310 = sst [smem:[#allocation17_spill]] %s2294_s1 }
   0x2   :  { %2311 = sst [smem:[#allocation18_spill]] %s2300_s7 }
   0x3   :  { %12 = vsyncpa [#allocation3], 0 }
   0x4   :  { %14 = vsyncpa [#allocation3 + $0x1], 0 }
   0x5   :  { %15 = vsyncpa [#allocation6], 0 }
   0x6   :  { %16 = vsyncpa [#allocation9], 0 }
   0x7   :  { %17 = vsyncpa [#allocation4], 0 }
   0x8   :  { %19 = vsyncpa [#allocation4 + $0x1], 0  ;;  %s1849_s24 = smov 0   ;;  %s1851_s25 = smov 0  }
   0x9   :  { %s1853_s26 = smov 0   ;;  %s1855_s27 = smov 0  }
   0xa   :  { %s1857_s28 = smov 0   ;;  %s1859_s29 = smov 0  }
   0xb LB: > { %2312 = sst [smem:[#allocation15_spill]] %s1775_s24  ;;  %s1219_s30 = sadd.s32 4294967295, %s1795_s29   ;;  %s1795_s29 = sphi %s1859_s29, %s25_s29   ;;  %s1791_s28 = sphi %s1857_s28, %s2340_s28   ;;  %s1787_s27 = sphi %s1855_s27, %s2339_s27   ;;  %s1783_s26 = sphi %s1853_s26, %s2338_s26   ;;  %s1779_s25 = sphi %s1851_s25, %s2337_s25   ;;  %s1775_s24 = sphi %s1849_s24, %s2336_s24  }
   0xc   : > { %s1220_s8 = sadd.s32 4294967294, %s1795_s29   ;;  %p59_p0 = scmp.ne.s32.totalorder %s1779_s25, %s1775_s24 }
   0xd   : > { %p1883_p1 = scmp.eq.s32.totalorder %s1219_s30, 0  ;;  %p1887_p2 = scmp.eq.s32.totalorder %s1219_s30, 1 }
   0xe   : > { %p217_p3 = scmp.eq.s32.totalorder %s1220_s8, 1  ;;  %p1221_p5 = scmp.ge.s32.totalorder %s1795_s29, 1 }
   0xf   : > { %s2313_s9 = scalar_select %p1883_p1, 1, 0 }
  0x10   : > { %s2314_s10 = scalar_select %p1887_p2, 1, 0 }
  0x11   : > { %p1893_p4 = por %p1883_p1, %p59_p0  ;;  %p1898_p6 = por %p217_p3, %p59_p0 }
  0x12   : > { %p224_p7 = scmp.lt.s32.totalorder %s1795_s29, 3  ;;  %s1797_s14 = smov [#allocation5]  }
  0x13   : > { %s2315_s11 = scalar_select %p1893_p4, 1, 0 }
  0x14   : > { %s2316_s12 = scalar_select %p1898_p6, 1, 0 }
  0x15   : > { %p1903_p8 = pnand %p1221_p5, %p224_p7  ;;  %s236_s15 = sshll.u32 %s1797_s14, 4  ;;  %s1907_s15 = int_to_ptr.vmem [resolvable:$true] %s236_s15 }
  0x16   : > { %2317 = sst [smem:[#allocation16_spill]] %s2316_s12  ;;  %s1798_s17 = smov [#allocation7]  }
  0x17   : > { %s2318_s13 = scalar_select %p1903_p8, 1, 0 }
  0x18   : > { %p1467_p9 = pneg %p1903_p8  ;;  %s252_s18 = sshll.u32 %s1798_s17, 4  ;;  %s1918_s18 = int_to_ptr.vmem [resolvable:$true] %s252_s18 }
  0x19   : > { %s2320_s1 = sld [smem:[#allocation17_spill]] }
  0x1a   : > { %p1914_p11 = pnand %p1467_p9, %p1883_p1 }
  0x1c   : > { %p1928_p13 = pneg %p1914_p11 }
  0x1f   : > { %s1591_s21 = scalar_lea.hbm %s2320_s1, 2048 }
  0x20   : > { %p1592_p12 = scmp.ne.s32.totalorder %s2320_s1, %s1591_s21  ;;  %p1598_p5 = scmp.lt.u32.totalorder %s1591_s21, %s2320_s1 }
  0x22   : > { %p1594_p0 = pnand %p1928_p13, %p1592_p12 }
  0x24   : > { %p1595_p3 = pneg %p1594_p0 }
  0x26   : > { %p1600_p7 = pnand %p1598_p5, %p1595_p3 }
  0x28   : > { %1603 = shalt.err (!%p1600_p7)
}
  0x29   : > { %s1604_s17 = scalar_lea.vmem %s1907_s15, 2048  ;;  %p1612_p1 = scmp.lt.s32.totalorder %s1907_s15, %s1907_s15 }
  0x2a   : > { %p1605_p9 = scmp.ne.s32.totalorder %s1907_s15, %s1604_s17  ;;  %p1613_p4 = scmp.lt.s32.totalorder %s1604_s17, %s1604_s17 }
  0x2c   : > { %p1607_p10 = pnand %p1605_p9, %p1928_p13  ;;  %p1614_p12 = por %p1613_p4, %p1612_p1 }
  0x2e   : > { %p1608_p6 = pneg %p1607_p10 }
  0x30   : > { %p1615_p0 = pnand %p1614_p12, %p1608_p6 }
  0x32   : > { %1618 = shalt.err (!%p1615_p0)
}
  0x33   : > { %s2307_s19 = smov 128   ;;  %s2308_s20 = smov 8  }
  0x34   : > { %1470 = dma.hbm_to_vmem [thread:$0]  (!%p1914_p11), %s2320_s1, 2048, %s1907_s15, [#allocation6], %s2307_s19, %s2307_s19, %s2308_s20  }
  0x35   : > { %s1619_s14 = scalar_lea.hbm %s2296_s3, 1024 }
  0x36   : > { %p1620_p1 = scmp.ne.s32.totalorder %s2296_s3, %s1619_s14  ;;  %p1626_p10 = scmp.lt.u32.totalorder %s1619_s14, %s2296_s3 }
  0x38   : > { %p1622_p4 = pnand %p1620_p1, %p1928_p13 }
  0x3a   : > { %p1623_p6 = pneg %p1622_p4 }
  0x3c   : > { %p1628_p3 = pnand %p1626_p10, %p1623_p6 }
  0x3e   : > { %1631 = shalt.err (!%p1628_p3)
}
  0x3f   : > { %s1632_s15 = scalar_lea.vmem %s1918_s18, 1024  ;;  %p1640_p12 = scmp.lt.s32.totalorder %s1918_s18, %s1918_s18 }
  0x40   : > { %p1633_p5 = scmp.ne.s32.totalorder %s1918_s18, %s1632_s15  ;;  %p1641_p0 = scmp.lt.s32.totalorder %s1632_s15, %s1632_s15 }
  0x42   : > { %p1635_p7 = pnand %p1633_p5, %p1928_p13  ;;  %p1642_p1 = por %p1641_p0, %p1640_p12 }
  0x44   : > { %p1636_p9 = pneg %p1635_p7 }
  0x46   : > { %p1643_p4 = pnand %p1642_p1, %p1636_p9 }
  0x48   : > { %1646 = shalt.err (!%p1643_p4)
}
  0x49   : > { %s1801_s12 = smov 64   ;;  %s1802_s7 = smov 4  }
  0x4a   : > { %1473 = dma.hbm_to_vmem [thread:$0]  (!%p1914_p11), %s2296_s3, 1024, %s1918_s18, [#allocation6], %s1801_s12, %s1801_s12, %s1802_s7  }
  0x4b   : > { %s1803_s22 = smov [#allocation8]   ;;  %s1647_s17 = scalar_lea.hbm %s2298_s5, 1024 }
  0x4c   : > { %s268_s23 = sshll.u32 %s1803_s22, 4  ;;  %p1648_p6 = scmp.ne.s32.totalorder %s2298_s5, %s1647_s17  ;;  %s269_s23 = int_to_ptr.vmem [resolvable:$true] %s268_s23 }
  0x4d   : > { %p1654_p5 = scmp.lt.u32.totalorder %s1647_s17, %s2298_s5 }
  0x4e   : > { %p1650_p10 = pnand %p1648_p6, %p1928_p13 }
  0x50   : > { %p1651_p3 = pneg %p1650_p10 }
  0x52   : > { %p1656_p7 = pnand %p1654_p5, %p1651_p3 }
  0x54   : > { %1659 = shalt.err (!%p1656_p7)
}
  0x55   : > { %s1660_s18 = scalar_lea.vmem %s269_s23, 1024  ;;  %p1668_p1 = scmp.lt.s32.totalorder %s269_s23, %s269_s23 }
  0x56   : > { %p1661_p9 = scmp.ne.s32.totalorder %s269_s23, %s1660_s18  ;;  %p1669_p4 = scmp.lt.s32.totalorder %s1660_s18, %s1660_s18 }
  0x58   : > { %p1663_p12 = pnand %p1661_p9, %p1928_p13  ;;  %p1670_p8 = por %p1669_p4, %p1668_p1 }
  0x5a   : > { %p1664_p0 = pneg %p1663_p12 }
  0x5c   : > { %p1671_p2 = pnand %p1670_p8, %p1664_p0 }
  0x5e   : > { %1674 = shalt.err (!%p1671_p2)
}
  0x5f   : > { %1476 = dma.hbm_to_vmem [thread:$0]  (!%p1914_p11), %s2298_s5, 1024, %s269_s23, [#allocation9], %s1801_s12, %s1801_s12, %s1802_s7  }
  0x60   : > { %s37_s1 = sadd.s32 1, %s1791_s28  ;;  %s46_s30 = sadd.s32 1, %s1783_s26 }
  0x61   : > { %p39_p8 = scmp.ge.s32.totalorder %s37_s1, 2  ;;  %p53_p2 = scmp.ne.s32.totalorder %s1783_s26, %s1779_s25 }
  0x62   : > { %p54_p13 = scmp.eq.s32.totalorder %s1795_s29, 0  ;;  %p2323_p10 = scmp.ne.s32.totalorder %s2314_s10, 0 }
  0x63   : > { %s2342_s1 = smov (%p39_p8, %s37_s1), 0  ;;  %p1488_p11 = scmp.lt.s32.totalorder %s1795_s29, 2 }
  0x64   : > { %p2000_p6 = por %p54_p13, %p53_p2  ;;  %p2006_p3 = por %p2323_p10, %p53_p2 }
  0x65   : > { %s41_s21 = ssub.s32 %s1791_s28, %s2342_s1  ;;  %s285_s12 = sand.u32 1, %s1783_s26  }
  0x66   : > { %p44_p5 = scmp.eq.s32.totalorder %s41_s21, 0  ;;  %s1226_s7 = sshll.u32 %s285_s12, 7 }
  0x67   : > { %s1290_s23 = sshll.u32 %s1791_s28, 11  ;;  %s289_s10 = scalar_lea.vmem [#allocation2], %s1226_s7 }
  0x68   : > { %s2015_s22 = scalar_select %p44_p5, %s1783_s26, %s46_s30  }
  0x69   : > { %s2021_s17 = scalar_lea.hbm %s2293_s0, %s1290_s23  ;;  %s298_s15 = sshll.u32 %s289_s10, 4  ;;  %s2023_s15 = int_to_ptr.vmem [resolvable:$true] %s298_s15 }
  0x6a   : > { %p2027_p7 = pnand %p1488_p11, %p2000_p6  ;;  %s2031_s19 = scalar_lea.sflag [#allocation3], %s285_s12 }
  0x6b   : > { %s1675_s24 = scalar_lea.hbm %s2021_s17, 2048  ;;  %s1680_s16 = scalar_lea.hbm %s2293_s0, 4096 }
  0x6c   : > { %p1676_p9 = scmp.ne.s32.totalorder %s2021_s17, %s1675_s24  ;;  %p1677_p12 = pneg %p2027_p7 }
  0x6d   : > { %p1681_p4 = scmp.lt.u32.totalorder %s2021_s17, %s2293_s0  ;;  %p1682_p8 = scmp.lt.u32.totalorder %s1680_s16, %s1675_s24 }
  0x6e   : > { %p1678_p0 = pnand %p1677_p12, %p1676_p9  ;;  %p1684_p13 = scmp.lt.u32.totalorder %s1675_s24, %s2021_s17 }
  0x6f   : > { %p1683_p2 = por %p1682_p8, %p1681_p4 }
  0x70   : > { %p1679_p1 = pneg %p1678_p0 }
  0x71   : > { %p1685_p6 = por %p1684_p13, %p1683_p2 }
  0x73   : > { %p1686_p10 = pnand %p1685_p6, %p1679_p1 }
  0x75   : > { %1689 = shalt.err (!%p1686_p10)
}
  0x76   : > { %s1690_s12 = scalar_lea.vmem %s2023_s15, 2048  ;;  %s1804_s8 = smov [#allocation2]  }
  0x77   : > { %p1691_p11 = scmp.ne.s32.totalorder %s2023_s15, %s1690_s12  ;;  %s1695_s14 = sshll.u32 %s1804_s8, 4  ;;  %s1696_s14 = int_to_ptr.vmem [resolvable:$false] %s1695_s14 }
  0x78   : > { %s1697_s10 = scalar_lea.vmem %s1696_s14, 4096  ;;  %p1698_p0 = scmp.lt.s32.totalorder %s2023_s15, %s1696_s14 }
  0x79   : > { %p1693_p5 = pnand %p1691_p11, %p1677_p12  ;;  %p1699_p4 = scmp.lt.s32.totalorder %s1697_s10, %s1690_s12 }
  0x7b   : > { %p1694_p9 = pneg %p1693_p5  ;;  %p1700_p8 = por %p1699_p4, %p1698_p0 }
  0x7d   : > { %p1701_p2 = pnand %p1700_p8, %p1694_p9 }
  0x7f   : > { %1704 = shalt.err (!%p1701_p2)
}
  0x80   : > { %s2326_s24 = smov 8   ;;  %s2327_s30 = smov 128  }
  0x81   : > { %1480 = dma.hbm_to_vmem [thread:$0]  (!%p2027_p7), %s2021_s17, 2048, %s2023_s15, %s2031_s19, %s2327_s30, %s2327_s30, %s2326_s24  }
  0x82   : > { %p2328_p12 = scmp.ne.s32.totalorder %s2318_s13, 0 }
  0x83   : > { %s2065_s21 = sand.u32 (!%p2328_p12), 1, %s1779_s25   ;;  %p2329_p1 = scmp.ne.s32.totalorder (!%p2328_p12), %s2315_s11, 0 }
  0x84   : > { %310 = sbr.rel (%p2328_p12) target bundleno = 913 (0x391), region = 48  ;;  %s1230_s16 = sshll.u32 (!%p2328_p12), %s2065_s21, 7 }
  0x85   : > { %s313_s7 = scalar_lea.sflag (!%p2328_p12), [#allocation3], %s2065_s21  ;;  %s2069_s23 = scalar_lea.vmem (!%p2328_p12), [#allocation2], %s1230_s16 }
  0x8b   : > { %1758 = dma.done.wait (%p2329_p1), %s313_s7, 2048  }
  0x8c   : > { %1760 = vsyncadd (%p2329_p1), %s313_s7, 4294965248  ;;  %p2330_p7 = scmp.ne.s32.totalorder %s2313_s9, 0 }
  0x8e   : > { %1762 = dma.done.wait (%p2330_p7), [#allocation6], 3072  }
  0x8f   : > { %1764 = vsyncadd (%p2330_p7), [#allocation6], 4294964224 }
  0x90   : > { %1766 = dma.done.wait (%p2330_p7), [#allocation9], 1024  }
  0x91   : > { %1768 = vsyncadd (%p2330_p7), [#allocation9], 4294966272  ;;  %v1805_v0 = vmov 0   ;;  %v1551_v1 = vld [vmem:[#allocation5 + $0x4] ss:$8 sps:$4 sm:$0xff]   ;;  %v1577_v16 = vld [vmem:[#allocation7 + $0x10] sm:$0xff]   ;;  %v404_v50 = vlaneseq }
  0x92   : > { %526 = vmatprep.mubr.bf16.mxu0 %v1805_v0  ;;  %v1553_v2 = vld [vmem:[#allocation5] ss:$8 sps:$4 sm:$0xff]   ;;  %494 = vmatprep.subr.bf16.mxu0 %v1551_v1  ;;  %v1554_v3 = vld [vmem:[#allocation5 + $0x14] ss:$8 sps:$4 sm:$0xff]   ;;  %v1556_v4 = vld [vmem:[#allocation5 + $0x10] ss:$8 sps:$4 sm:$0xff]  }
  0x93   : > { %495 = vmatpush1.bf16.msra.mxu0 %v1553_v2  ;;  %v1557_v5 = vld [vmem:[#allocation5 + $0x24] ss:$8 sps:$4 sm:$0xff]   ;;  %v1559_v6 = vld [vmem:[#allocation5 + $0x20] ss:$8 sps:$4 sm:$0xff]   ;;  %v1560_v7 = vld [vmem:[#allocation5 + $0x34] ss:$8 sps:$4 sm:$0xff]  }
  0x94   : > { %496 = vmatprep.subr.bf16.mxu0 %v1554_v3  ;;  %v1562_v8 = vld [vmem:[#allocation5 + $0x30] ss:$8 sps:$4 sm:$0xff]   ;;  %v1563_v9 = vld [vmem:[#allocation5 + $0x44] ss:$8 sps:$4 sm:$0xff]   ;;  %v1565_v10 = vld [vmem:[#allocation5 + $0x40] ss:$8 sps:$4 sm:$0xff]  }
  0x95   : > { %v1566_v11 = vld [vmem:[#allocation5 + $0x54] ss:$8 sps:$4 sm:$0xff]   ;;  %v1575_v12 = vld [vmem:[#allocation7] sm:$0xff]   ;;  %v1576_v13 = vld [vmem:[#allocation7 + $0x8] sm:$0xff]   ;;  %v2107_v51 = vshrl.u32 %v404_v50, 7  ;;  %s1234_s19 = sshll.u32 %s2065_s21, 6 }
  0x96   : > { %v1568_v14 = vld [vmem:[#allocation5 + $0x50] ss:$8 sps:$4 sm:$0xff]   ;;  %1387 = vmatprep.subr.bf16.mxu1 %v1575_v12  ;;  %v1569_v15 = vld [vmem:[#allocation5 + $0x64] ss:$8 sps:$4 sm:$0xff]   ;;  %v1571_v17 = vld [vmem:[#allocation5 + $0x60] ss:$8 sps:$4 sm:$0xff]  }
  0x97   : > { %497 = vmatpush1.bf16.msra.mxu0 %v1556_v4  ;;  %1388 = vmatpush3.bf16.msra.mxu1 %v1575_v12  ;;  %v1572_v18 = vld [vmem:[#allocation5 + $0x74] ss:$8 sps:$4 sm:$0xff]   ;;  %v1574_v20 = vld [vmem:[#allocation5 + $0x70] ss:$8 sps:$4 sm:$0xff]   ;;  %v362_v21 = vld [vmem:[%s2069_s23] sm:$0xff]  ;;  %v410_v52 = vsub.s32 1, %v2107_v51 }
  0x98   : > { %498 = vmatprep.subr.bf16.mxu0 %v1557_v5  ;;  %1389 = vmatprep.subr.bf16.mxu1 %v1576_v13  ;;  %v1578_v19 = vld [vmem:[#allocation7 + $0x18] sm:$0xff]   ;;  %v363_v22 = vld [vmem:[%s2069_s23 + $0x8] sm:$0xff]  ;;  %v364_v24 = vld [vmem:[%s2069_s23 + $0x10] sm:$0xff]  ;;  %s2191_s12 = scalar_lea.vmem [#allocation10], %s1234_s19  ;;  %s1307_s8 = sshll.u32 %s1787_s27, 10 }
  0x99   : > { %v378_v23 = vpack.c.bf16 %v363_v22, %v362_v21  ;;  %v365_v25 = vld [vmem:[%s2069_s23 + $0x18] sm:$0xff]  ;;  %v366_v27 = vld [vmem:[%s2069_s23 + $0x20] sm:$0xff]  ;;  %v367_v28 = vld [vmem:[%s2069_s23 + $0x28] sm:$0xff]  ;;  %s1103_s14 = sshll.u32 %s2191_s12, 4  ;;  %s2331_s30 = sld [smem:[#allocation18_spill]]  ;;  %s2242_s14 = int_to_ptr.vmem [resolvable:$true] %s1103_s14 }
  0x9a   : > { %v379_v26 = vpack.c.bf16 %v365_v25, %v364_v24  ;;  %v380_v29 = vpack.c.bf16 %v367_v28, %v366_v27  ;;  %v368_v30 = vld [vmem:[%s2069_s23 + $0x30] sm:$0xff]  ;;  %v369_v31 = vld [vmem:[%s2069_s23 + $0x38] sm:$0xff]  ;;  %v370_v33 = vld [vmem:[%s2069_s23 + $0x40] sm:$0xff]  ;;  %s1088_s7 = scalar_lea.sflag [#allocation4], %s2065_s21  ;;  %s1806_s27 = smov [#allocation10]  }
  0x9b   : > { %499 = vmatpush1.bf16.msra.mxu0 %v1559_v6  ;;  %1390 = vmatpush3.bf16.msra.mxu1 %v1576_v13  ;;  %v381_v32 = vpack.c.bf16 %v369_v31, %v368_v30  ;;  %v371_v34 = vld [vmem:[%s2069_s23 + $0x48] sm:$0xff]  ;;  %v372_v36 = vld [vmem:[%s2069_s23 + $0x50] sm:$0xff]  ;;  %v373_v37 = vld [vmem:[%s2069_s23 + $0x58] sm:$0xff]  ;;  %s1709_s9 = sshll.u32 %s1806_s27, 4  ;;  %s1710_s9 = int_to_ptr.vmem [resolvable:$false] %s1709_s9 }
  0x9c   : > { %500 = vmatprep.subr.bf16.mxu0 %v1560_v7  ;;  %1391 = vmatprep.subr.bf16.mxu1 %v1577_v16  ;;  %v382_v35 = vpack.c.bf16 %v371_v34, %v370_v33  ;;  %v383_v38 = vpack.c.bf16 %v373_v37, %v372_v36  ;;  %v374_v39 = vld [vmem:[%s2069_s23 + $0x60] sm:$0xff]  ;;  %v375_v40 = vld [vmem:[%s2069_s23 + $0x68] sm:$0xff]  ;;  %v376_v42 = vld [vmem:[%s2069_s23 + $0x70] sm:$0xff]  ;;  %s1711_s11 = scalar_lea.vmem %s1710_s9, 2048  ;;  %p1712_p11 = scmp.lt.s32.totalorder %s2242_s14, %s1710_s9 }
  0x9d   : > { %v384_v41 = vpack.c.bf16 %v375_v40, %v374_v39  ;;  %v377_v43 = vld [vmem:[%s2069_s23 + $0x78] sm:$0xff]  ;;  %v1579_v45 = vld [vmem:[#allocation7 + $0x20] sm:$0xff]   ;;  %v1580_v46 = vld [vmem:[#allocation7 + $0x28] sm:$0xff]   ;;  %s1705_s23 = scalar_lea.vmem %s2242_s14, 1024 }
  0x9e   : > { %v385_v44 = vpack.c.bf16 %v377_v43, %v376_v42  ;;  %v1581_v47 = vld [vmem:[#allocation7 + $0x30] sm:$0xff]   ;;  %v1582_v48 = vld [vmem:[#allocation7 + $0x38] sm:$0xff]   ;;  %v1583_v49 = vld [vmem:[#allocation8] sm:$0xff]   ;;  %p1706_p13 = scmp.ne.s32.totalorder %s2242_s14, %s1705_s23  ;;  %p1713_p5 = scmp.lt.s32.totalorder %s1711_s11, %s1705_s23 }
  0x9f   : > { %501 = vmatpush1.bf16.msra.mxu0 %v1562_v8  ;;  %1392 = vmatpush3.bf16.msra.mxu1 %v1577_v16  ;;  %v2113_v53 = vld [vmem:[%s2295_s2] sm:$0x3]  ;;  %v1585_v16 = vld [vmem:[#allocation8 + $0x10] sm:$0xff]   ;;  %v1586_v21 = vld [vmem:[#allocation8 + $0x18] sm:$0xff]   ;;  %s2240_s16 = scalar_lea.hbm %s2331_s30, %s1307_s8 }
  0xa0   : > { %502 = vmatprep.subr.bf16.mxu0 %v1563_v9  ;;  %1393 = vmatprep.subr.bf16.mxu1 %v1578_v19  ;;  %v2116_v54 = vrot.slane %v2113_v53, %v410_v52  ;;  %v1587_v27 = vld [vmem:[#allocation8 + $0x20] sm:$0xff]   ;;  %p1707_p6 = pnand %p1706_p13, %p2006_p3  ;;  %p1714_p9 = por %p1713_p5, %p1712_p11 }
  0xa2   : > { %p1708_p10 = pneg %p1707_p6 }
  0xa3   : > { %503 = vmatpush1.bf16.msra.mxu0 %v1565_v10  ;;  %1394 = vmatpush3.bf16.msra.mxu1 %v1578_v19  ;;  %v1584_v10 = vld [vmem:[#allocation8 + $0x8] sm:$0xff]  }
  0xa4   : > { %504 = vmatprep.subr.bf16.mxu0 %v1566_v11  ;;  %1395 = vmatprep.subr.bf16.mxu1 %v1579_v45  ;;  %p1715_p0 = pnand %p1714_p9, %p1708_p10 }
  0xa7   : > { %505 = vmatpush1.bf16.msra.mxu0 %v1568_v14  ;;  %1396 = vmatpush3.bf16.msra.mxu1 %v1579_v45 }
  0xa8   : > { %506 = vmatprep.subr.bf16.mxu0 %v1569_v15  ;;  %1397 = vmatprep.subr.bf16.mxu1 %v1580_v46 }
  0xab   : > { %507 = vmatpush1.bf16.msra.mxu0 %v1571_v17  ;;  %1398 = vmatpush3.bf16.msra.mxu1 %v1580_v46 }
  0xac   : > { %508 = vmatprep.subr.bf16.mxu0 %v1572_v18  ;;  %1399 = vmatprep.subr.bf16.mxu1 %v1581_v47 }
  0xaf   : > { %509 = vmatpush1.bf16.msra.mxu0 %v1574_v20  ;;  %1400 = vmatpush3.bf16.msra.mxu1 %v1581_v47 }
  0xb0   : > { %1401 = vmatprep.subr.bf16.mxu1 %v1582_v48 }
  0xb2   : > { %527 = vmatmul.mubr.bf16.vlgmr.msra.gmra.mrb[0].mxu0 %v378_v23 }
  0xb3   : > { %536 = vmatprep.mubr.bf16.mxu0 %v1805_v0  ;;  %1402 = vmatpush3.bf16.msra.mxu1 %v1582_v48 }
  0xb4   : > { %1419 = vmatprep.subr.bf16.mxu1 %v1583_v49 }
  0xba   : > { %537 = vmatmul.mubr.bf16.gmra.mrb[4].mxu0 %v379_v26 }
  0xbb   : > { %546 = vmatprep.mubr.bf16.mxu0 %v1805_v0 }
  0xc2   : > { %547 = vmatmul.mubr.bf16.gmra.mrb[8].mxu0 %v380_v29 }
  0xc3   : > { %556 = vmatprep.mubr.bf16.mxu0 %v1805_v0 }
  0xca   : > { %557 = vmatmul.mubr.bf16.gmra.mrb[12].mxu0 %v381_v32  ;;  %v1588_v32 = vld [vmem:[#allocation8 + $0x28] sm:$0xff]  }
  0xcb   : > { %566 = vmatprep.mubr.bf16.mxu0 %v1805_v0 }
  0xd2   : > { %567 = vmatmul.mubr.bf16.gmra.mrb[16].mxu0 %v382_v35 }
  0xd3   : > { %576 = vmatprep.mubr.bf16.mxu0 %v1805_v0 }
  0xda   : > { %577 = vmatmul.mubr.bf16.gmra.mrb[20].mxu0 %v383_v38 }
  0xdb   : > { %586 = vmatprep.mubr.bf16.mxu0 %v1805_v0 }
  0xe2   : > { %587 = vmatmul.mubr.bf16.gmra.mrb[24].mxu0 %v384_v41 }
  0xe3   : > { %596 = vmatprep.mubr.bf16.mxu0 %v1805_v0 }
  0xea   : > { %597 = vmatmul.mubr.bf16.gmra.mrb[28].mxu0 %v385_v44 }
 0x185   : > { %v2118_v55 = vpop.f32.mrb[0].mxu0 }
 0x186   : > { %v530_v56 = vpop.f32.mrb[1].mxu0 }
 0x187   : > { %v531_v57 = vadd.f32 %v530_v56, %v2116_v54  ;;  %v2121_v58 = vpop.f32.mrb[2].mxu0 }
 0x188   : > { %v534_v59 = vpop.f32.mrb[3].mxu0 }
 0x189   : > { %v535_v60 = vadd.f32 %v534_v59, %v2116_v54  ;;  %v607_v61 = vmax.f32 %v531_v57, 0.0 }
 0x18b   : > { %v608_v62 = vmax.f32 %v535_v60, 0.0 }
 0x18d   : > { %v2124_v63 = vpop.f32.mrb[4].mxu0  ;;  %v623_v0 = vpack.c.bf16 %v608_v62, %v607_v61 }
 0x18e   : > { %v540_v1 = vpop.f32.mrb[5].mxu0 }
 0x18f   : > { %v541_v2 = vadd.f32 %v540_v1, %v2116_v54  ;;  %v2127_v3 = vpop.f32.mrb[6].mxu0  ;;  %1403 = vmatprep.mubr.bf16.mxu1 %v623_v0 }
 0x190   : > { %v544_v4 = vpop.f32.mrb[7].mxu0 }
 0x191   : > { %v545_v5 = vadd.f32 %v544_v4, %v2116_v54  ;;  %v609_v6 = vmax.f32 %v541_v2, 0.0 }
 0x193   : > { %v610_v7 = vmax.f32 %v545_v5, 0.0 }
 0x195   : > { %v624_v8 = vpack.c.bf16 %v610_v7, %v609_v6  ;;  %v2130_v9 = vpop.f32.mrb[8].mxu0 }
 0x196   : > { %v550_v11 = vpop.f32.mrb[9].mxu0 }
 0x197   : > { %v551_v12 = vadd.f32 %v550_v11, %v2116_v54  ;;  %v2133_v13 = vpop.f32.mrb[10].mxu0  ;;  %1404 = vmatmul.mubr.bf16.vlgmr.msra.gmra.mrb[0].mxu1 %v624_v8 }
 0x198   : > { %v554_v14 = vpop.f32.mrb[11].mxu0  ;;  %1420 = vmatpush3.bf16.msra.mxu1 %v1583_v49 }
 0x199   : > { %v555_v15 = vadd.f32 %v554_v14, %v2116_v54  ;;  %1421 = vmatprep.subr.bf16.mxu1 %v1584_v10  ;;  %v611_v17 = vmax.f32 %v551_v12, 0.0  ;;  %v1589_v12 = vld [vmem:[#allocation8 + $0x30] sm:$0xff]   ;;  %v1590_v14 = vld [vmem:[#allocation8 + $0x38] sm:$0xff]  }
 0x19b   : > { %v612_v18 = vmax.f32 %v555_v15, 0.0  ;;  %v1251_v15 = vld [vmem:[%s2297_s4] ss:$0 sm:$0xff] }
 0x19c   : > { %1422 = vmatpush3.bf16.msra.mxu1 %v1584_v10 }
 0x19d   : > { %v625_v19 = vpack.c.bf16 %v612_v18, %v611_v17  ;;  %v2136_v20 = vpop.f32.mrb[12].mxu0  ;;  %1423 = vmatprep.subr.bf16.mxu1 %v1585_v16 }
 0x19e   : > { %v560_v22 = vpop.f32.mrb[13].mxu0 }
 0x19f   : > { %v561_v23 = vadd.f32 %v560_v22, %v2116_v54  ;;  %v2139_v24 = vpop.f32.mrb[14].mxu0  ;;  %1407 = vmatprep.mubr.bf16.mxu1 %v625_v19 }
 0x1a0   : > { %v564_v25 = vpop.f32.mrb[15].mxu0  ;;  %1424 = vmatpush3.bf16.msra.mxu1 %v1585_v16 }
 0x1a1   : > { %v565_v26 = vadd.f32 %v564_v25, %v2116_v54  ;;  %1425 = vmatprep.subr.bf16.mxu1 %v1586_v21  ;;  %v613_v28 = vmax.f32 %v561_v23, 0.0 }
 0x1a3   : > { %v614_v29 = vmax.f32 %v565_v26, 0.0 }
 0x1a4   : > { %1426 = vmatpush3.bf16.msra.mxu1 %v1586_v21 }
 0x1a5   : > { %v626_v30 = vpack.c.bf16 %v614_v29, %v613_v28  ;;  %v2142_v31 = vpop.f32.mrb[16].mxu0  ;;  %1427 = vmatprep.subr.bf16.mxu1 %v1587_v27 }
 0x1a6   : > { %v570_v33 = vpop.f32.mrb[17].mxu0 }
 0x1a7   : > { %v571_v34 = vadd.f32 %v570_v33, %v2116_v54  ;;  %v2145_v35 = vpop.f32.mrb[18].mxu0  ;;  %1408 = vmatmul.mubr.bf16.gmra.mrb[4].mxu1 %v626_v30 }
 0x1a8   : > { %v574_v36 = vpop.f32.mrb[19].mxu0  ;;  %1428 = vmatpush3.bf16.msra.mxu1 %v1587_v27 }
 0x1a9   : > { %v575_v37 = vadd.f32 %v574_v36, %v2116_v54  ;;  %1429 = vmatprep.subr.bf16.mxu1 %v1588_v32  ;;  %v615_v38 = vmax.f32 %v571_v34, 0.0 }
 0x1ab   : > { %v616_v39 = vmax.f32 %v575_v37, 0.0 }
 0x1ac   : > { %1430 = vmatpush3.bf16.msra.mxu1 %v1588_v32 }
 0x1ad   : > { %v627_v40 = vpack.c.bf16 %v616_v39, %v615_v38  ;;  %v2148_v41 = vpop.f32.mrb[20].mxu0  ;;  %1431 = vmatprep.subr.bf16.mxu1 %v1589_v12 }
 0x1ae   : > { %v580_v42 = vpop.f32.mrb[21].mxu0 }
 0x1af   : > { %v581_v43 = vadd.f32 %v580_v42, %v2116_v54  ;;  %v2151_v44 = vpop.f32.mrb[22].mxu0  ;;  %1411 = vmatprep.mubr.bf16.mxu1 %v627_v40 }
 0x1b0   : > { %v584_v45 = vpop.f32.mrb[23].mxu0  ;;  %1432 = vmatpush3.bf16.msra.mxu1 %v1589_v12 }
 0x1b1   : > { %v585_v46 = vadd.f32 %v584_v45, %v2116_v54  ;;  %v617_v47 = vmax.f32 %v581_v43, 0.0  ;;  %1433 = vmatprep.subr.bf16.mxu1 %v1590_v14 }
 0x1b3   : > { %v618_v48 = vmax.f32 %v585_v46, 0.0 }
 0x1b4   : > { %1434 = vmatpush3.bf16.msra.mxu1 %v1590_v14 }
 0x1b5   : > { %v628_v49 = vpack.c.bf16 %v618_v48, %v617_v47  ;;  %v2154_v50 = vpop.f32.mrb[24].mxu0 }
 0x1b6   : > { %v590_v52 = vpop.f32.mrb[25].mxu0 }
 0x1b7   : > { %v591_v56 = vadd.f32 %v590_v52, %v2116_v54  ;;  %v2157_v57 = vpop.f32.mrb[26].mxu0  ;;  %1412 = vmatmul.mubr.bf16.gmra.mrb[8].mxu1 %v628_v49 }
 0x1b8   : > { %v594_v59 = vpop.f32.mrb[27].mxu0 }
 0x1b9   : > { %v595_v60 = vadd.f32 %v594_v59, %v2116_v54  ;;  %v619_v61 = vmax.f32 %v591_v56, 0.0 }
 0x1bb   : > { %v620_v62 = vmax.f32 %v595_v60, 0.0 }
 0x1bd   : > { %v629_v0 = vpack.c.bf16 %v620_v62, %v619_v61  ;;  %v2160_v1 = vpop.f32.mrb[28].mxu0 }
 0x1be   : > { %v600_v2 = vpop.f32.mrb[29].mxu0 }
 0x1bf   : > { %v601_v4 = vadd.f32 %v600_v2, %v2116_v54  ;;  %v2163_v5 = vpop.f32.mrb[30].mxu0  ;;  %1415 = vmatprep.mubr.bf16.mxu1 %v629_v0 }
 0x1c0   : > { %v604_v6 = vpop.f32.mrb[31].mxu0 }
 0x1c1   : > { %v605_v7 = vadd.f32 %v604_v6, %v2116_v54  ;;  %v621_v8 = vmax.f32 %v601_v4, 0.0 }
 0x1c3   : > { %v622_v10 = vmax.f32 %v605_v7, 0.0 }
 0x1c5   : > { %v630_v11 = vpack.c.bf16 %v622_v10, %v621_v8 }
 0x1c7   : > { %1416 = vmatmul.mubr.bf16.gmra.mrb[12].mxu1 %v630_v11 }
 0x26a   : > { %v1405_v16 = vpop.f32.mrb[0].mxu1 }
 0x26b   : > { %v745_v17 = vadd.f32 %v1405_v16, %v1251_v15  ;;  %v736_v18 = vpop.f32.mrb[1].mxu1 }
 0x26c   : > { %v737_v19 = vadd.f32 %v1251_v15, %v736_v18  ;;  %v1406_v21 = vpop.f32.mrb[2].mxu1 }
 0x26d   : > { %v748_v54 = vadd.f32 %v1406_v21, %v1251_v15  ;;  %v739_v22 = vpop.f32.mrb[3].mxu1  ;;  %v801_v25 = vmax.f32 %v745_v17, 0.0 }
 0x26e   : > { %v740_v23 = vadd.f32 %v1251_v15, %v739_v22  ;;  %v799_v27 = vmax.f32 %v737_v19, 0.0 }
 0x26f   : > { %v802_v26 = vmax.f32 %v748_v54, 0.0 }
 0x270   : > { %v800_v28 = vmax.f32 %v740_v23, 0.0 }
 0x271   : > { %v816_v29 = vpack.c.bf16 %v802_v26, %v801_v25 }
 0x272   : > { %v815_v30 = vpack.c.bf16 %v800_v28, %v799_v27  ;;  %v406_v28 = vsub.s32 0, %v2107_v51 }
 0x274   : > { %1435 = vmatprep.mubr.bf16.mxu1 %v815_v30  ;;  %v2176_v30 = vld [vmem:[%s2299_s6] ss:$0 sm:$0xff] }
 0x275   : > { %1436 = vmatmul.mubr.bf16.vlgmr.msra.gmra.mrb[16].mxu1 %v816_v29  ;;  %v2171_v29 = vrot.slane %v2113_v53, %v406_v28 }
 0x277   : > { %v543_v53 = vadd.f32 %v2127_v3, %v2171_v29 }
 0x27a   : > { %v1409_v32 = vpop.f32.mrb[4].mxu1 }
 0x27b   : > { %v761_v33 = vadd.f32 %v1409_v32, %v1251_v15  ;;  %v752_v34 = vpop.f32.mrb[5].mxu1  ;;  %v539_v32 = vadd.f32 %v2124_v63, %v2171_v29  ;;  %v533_v63 = vadd.f32 %v2121_v58, %v2171_v29 }
 0x27c   : > { %v753_v36 = vadd.f32 %v1251_v15, %v752_v34  ;;  %v1410_v37 = vpop.f32.mrb[6].mxu1 }
 0x27d   : > { %v764_v38 = vadd.f32 %v1410_v37, %v1251_v15  ;;  %v755_v39 = vpop.f32.mrb[7].mxu1  ;;  %v805_v42 = vmax.f32 %v761_v33, 0.0 }
 0x27e   : > { %v756_v40 = vadd.f32 %v1251_v15, %v755_v39  ;;  %v803_v45 = vmax.f32 %v753_v36, 0.0  ;;  %v529_v36 = vadd.f32 %v2118_v55, %v2171_v29 }
 0x27f   : > { %v806_v43 = vmax.f32 %v764_v38, 0.0 }
 0x280   : > { %v804_v46 = vmax.f32 %v756_v40, 0.0 }
 0x281   : > { %v818_v47 = vpack.c.bf16 %v806_v43, %v805_v42 }
 0x282   : > { %v817_v48 = vpack.c.bf16 %v804_v46, %v803_v45 }
 0x284   : > { %1439 = vmatprep.mubr.bf16.mxu1 %v817_v48  ;;  %v559_v48 = vadd.f32 %v2136_v20, %v2171_v29  ;;  %v553_v20 = vadd.f32 %v2133_v13, %v2171_v29  ;;  %v569_v13 = vadd.f32 %v2142_v31, %v2171_v29 }
 0x285   : > { %1440 = vmatmul.mubr.bf16.gmra.mrb[20].mxu1 %v818_v47 }
 0x28a   : > { %v1413_v49 = vpop.f32.mrb[8].mxu1 }
 0x28b   : > { %v777_v52 = vadd.f32 %v1413_v49, %v1251_v15  ;;  %v768_v56 = vpop.f32.mrb[9].mxu1 }
 0x28c   : > { %v769_v59 = vadd.f32 %v1251_v15, %v768_v56  ;;  %v1414_v60 = vpop.f32.mrb[10].mxu1 }
 0x28d   : > { %v780_v61 = vadd.f32 %v1414_v60, %v1251_v15  ;;  %v771_v62 = vpop.f32.mrb[11].mxu1  ;;  %v809_v2 = vmax.f32 %v777_v52, 0.0  ;;  %v549_v52 = vadd.f32 %v2130_v9, %v2171_v29  ;;  %v563_v60 = vadd.f32 %v2139_v24, %v2171_v29 }
 0x28e   : > { %v772_v0 = vadd.f32 %v1251_v15, %v771_v62  ;;  %v807_v6 = vmax.f32 %v769_v59, 0.0  ;;  %v579_v24 = vadd.f32 %v2148_v41, %v2171_v29  ;;  %v573_v41 = vadd.f32 %v2145_v35, %v2171_v29 }
 0x28f   : > { %v810_v4 = vmax.f32 %v780_v61, 0.0  ;;  %v589_v35 = vadd.f32 %v2154_v50, %v2171_v29 }
 0x290   : > { %v808_v7 = vmax.f32 %v772_v0, 0.0 }
 0x291   : > { %v820_v8 = vpack.c.bf16 %v810_v4, %v809_v2 }
 0x292   : > { %v819_v10 = vpack.c.bf16 %v808_v7, %v807_v6 }
 0x294   : > { %1443 = vmatprep.mubr.bf16.mxu1 %v819_v10 }
 0x295   : > { %1444 = vmatmul.mubr.bf16.gmra.mrb[24].mxu1 %v820_v8 }
 0x29a   : > { %v1417_v11 = vpop.f32.mrb[12].mxu1 }
 0x29b   : > { %v793_v12 = vadd.f32 %v1417_v11, %v1251_v15  ;;  %v784_v14 = vpop.f32.mrb[13].mxu1 }
 0x29c   : > { %v785_v16 = vadd.f32 %v1251_v15, %v784_v14  ;;  %v1418_v17 = vpop.f32.mrb[14].mxu1 }
 0x29d   : > { %v796_v18 = vadd.f32 %v1418_v17, %v1251_v15  ;;  %v787_v19 = vpop.f32.mrb[15].mxu1  ;;  %v813_v54 = vmax.f32 %v793_v12, 0.0  ;;  %v583_v17 = vadd.f32 %v2151_v44, %v2171_v29  ;;  %v599_v44 = vadd.f32 %v2160_v1, %v2171_v29 }
 0x29e   : > { %v788_v21 = vadd.f32 %v1251_v15, %v787_v19  ;;  %v811_v23 = vmax.f32 %v785_v16, 0.0  ;;  %v593_v1 = vadd.f32 %v2157_v57, %v2171_v29 }
 0x29f   : > { %v814_v22 = vmax.f32 %v796_v18, 0.0 }
 0x2a0   : > { %v812_v25 = vmax.f32 %v788_v21, 0.0 }
 0x2a1   : > { %v822_v26 = vpack.c.bf16 %v814_v22, %v813_v54 }
 0x2a2   : > { %v821_v27 = vpack.c.bf16 %v812_v25, %v811_v23 }
 0x2a4   : > { %1447 = vmatprep.mubr.bf16.mxu1 %v821_v27 }
 0x2a5   : > { %1448 = vmatmul.mubr.bf16.gmra.mrb[28].mxu1 %v822_v26 }
 0x348   : > { %v1437_v15 = vpop.f32.mrb[16].mxu1 }
 0x349   : > { %v937_v33 = vadd.f32 %v1437_v15, %v2176_v30  ;;  %v928_v34 = vpop.f32.mrb[17].mxu1 }
 0x34a   : > { %v929_v51 = vadd.f32 %v2176_v30, %v928_v34  ;;  %v1438_v37 = vpop.f32.mrb[18].mxu1  ;;  %v603_v34 = vadd.f32 %v2163_v5, %v2171_v29 }
 0x34b   : > { %v993_v38 = vadd.f32 %v937_v33, %v539_v32  ;;  %v940_v39 = vadd.f32 %v1438_v37, %v2176_v30  ;;  %v931_v40 = vpop.f32.mrb[19].mxu1 }
 0x34c   : > { %v991_v42 = vadd.f32 %v929_v51, %v529_v36  ;;  %v932_v43 = vadd.f32 %v2176_v30, %v931_v40 }
 0x34d   : > { %v994_v45 = vadd.f32 %v940_v39, %v543_v53 }
 0x34e   : > { %v992_v46 = vadd.f32 %v932_v43, %v533_v63 }
 0x34f   : > { %v1316_v55 = vpack.c.bf16 %v994_v45, %v993_v38 }
 0x350   : > { %v1311_v47 = vpack.c.bf16 %v992_v46, %v991_v42 }
 0x351   : > { %1348 = vst [vmem:[%s2191_s12 + $0x8] sm:$0xff] %v1316_v55  }
 0x352   : > { %1312 = vst [vmem:[%s2191_s12] sm:$0xff] %v1311_v47  }
 0x358   : > { %v1441_v3 = vpop.f32.mrb[20].mxu1 }
 0x359   : > { %v953_v49 = vadd.f32 %v1441_v3, %v2176_v30  ;;  %v944_v58 = vpop.f32.mrb[21].mxu1 }
 0x35a   : > { %v945_v56 = vadd.f32 %v2176_v30, %v944_v58  ;;  %v1442_v59 = vpop.f32.mrb[22].mxu1 }
 0x35b   : > { %v997_v61 = vadd.f32 %v953_v49, %v559_v48  ;;  %v956_v62 = vadd.f32 %v1442_v59, %v2176_v30  ;;  %v947_v0 = vpop.f32.mrb[23].mxu1 }
 0x35c   : > { %v995_v2 = vadd.f32 %v945_v56, %v549_v52  ;;  %v948_v4 = vadd.f32 %v2176_v30, %v947_v0 }
 0x35d   : > { %v998_v6 = vadd.f32 %v956_v62, %v563_v60 }
 0x35e   : > { %v996_v7 = vadd.f32 %v948_v4, %v553_v20 }
 0x35f   : > { %v1326_v8 = vpack.c.bf16 %v998_v6, %v997_v61 }
 0x360   : > { %v1321_v9 = vpack.c.bf16 %v996_v7, %v995_v2 }
 0x361   : > { %1350 = vst [vmem:[%s2191_s12 + $0x18] sm:$0xff] %v1326_v8  }
 0x362   : > { %1349 = vst [vmem:[%s2191_s12 + $0x10] sm:$0xff] %v1321_v9  }
 0x368   : > { %v1445_v10 = vpop.f32.mrb[24].mxu1 }
 0x369   : > { %v969_v11 = vadd.f32 %v1445_v10, %v2176_v30  ;;  %v960_v12 = vpop.f32.mrb[25].mxu1 }
 0x36a   : > { %v961_v14 = vadd.f32 %v2176_v30, %v960_v12  ;;  %v1446_v16 = vpop.f32.mrb[26].mxu1 }
 0x36b   : > { %v1001_v18 = vadd.f32 %v969_v11, %v579_v24  ;;  %v972_v19 = vadd.f32 %v1446_v16, %v2176_v30  ;;  %v963_v21 = vpop.f32.mrb[27].mxu1 }
 0x36c   : > { %v999_v54 = vadd.f32 %v961_v14, %v569_v13  ;;  %v964_v22 = vadd.f32 %v2176_v30, %v963_v21 }
 0x36d   : > { %v1002_v23 = vadd.f32 %v972_v19, %v583_v17 }
 0x36e   : > { %v1000_v25 = vadd.f32 %v964_v22, %v573_v41 }
 0x36f   : > { %v1336_v26 = vpack.c.bf16 %v1002_v23, %v1001_v18 }
 0x370   : > { %v1331_v31 = vpack.c.bf16 %v1000_v25, %v999_v54 }
 0x371   : > { %1352 = vst [vmem:[%s2191_s12 + $0x28] sm:$0xff] %v1336_v26  }
 0x372   : > { %1351 = vst [vmem:[%s2191_s12 + $0x20] sm:$0xff] %v1331_v31  }
 0x378   : > { %v1449_v27 = vpop.f32.mrb[28].mxu1 }
 0x379   : > { %v985_v28 = vadd.f32 %v1449_v27, %v2176_v30  ;;  %v976_v15 = vpop.f32.mrb[29].mxu1 }
 0x37a   : > { %v977_v32 = vadd.f32 %v2176_v30, %v976_v15  ;;  %v1450_v33 = vpop.f32.mrb[30].mxu1 }
 0x37b   : > { %v1005_v36 = vadd.f32 %v985_v28, %v599_v44  ;;  %v988_v51 = vadd.f32 %v1450_v33, %v2176_v30  ;;  %v979_v37 = vpop.f32.mrb[31].mxu1 }
 0x37c   : > { %v1003_v53 = vadd.f32 %v977_v32, %v589_v35  ;;  %v980_v50 = vadd.f32 %v2176_v30, %v979_v37 }
 0x37d   : > { %v1006_v38 = vadd.f32 %v988_v51, %v603_v34 }
 0x37e   : > { %v1004_v39 = vadd.f32 %v980_v50, %v593_v1 }
 0x37f   : > { %v1346_v40 = vpack.c.bf16 %v1006_v38, %v1005_v36 }
 0x380   : > { %v1341_v57 = vpack.c.bf16 %v1004_v39, %v1003_v53 }
 0x381   : > { %1354 = vst [vmem:[%s2191_s12 + $0x38] sm:$0xff] %v1346_v40  }
 0x382   : > { %1353 = vst [vmem:[%s2191_s12 + $0x30] sm:$0xff] %v1341_v57  }
 0x383   : > { %1718 = shalt.err (!%p1715_p0)
}
 0x384   : > { %s1719_s13 = scalar_lea.hbm %s2240_s16, 1024  ;;  %s1723_s18 = scalar_lea.hbm %s2331_s30, 2048 }
 0x385   : > { %p1720_p4 = scmp.ne.s32.totalorder %s2240_s16, %s1719_s13  ;;  %p1724_p12 = scmp.lt.u32.totalorder %s2240_s16, %s2331_s30 }
 0x386   : > { %p1725_p1 = scmp.lt.u32.totalorder %s1723_s18, %s1719_s13  ;;  %p1727_p13 = scmp.lt.u32.totalorder %s1719_s13, %s2240_s16 }
 0x387   : > { %p1721_p8 = pnand %p1720_p4, %p2006_p3 }
 0x388   : > { %p1726_p7 = por %p1725_p1, %p1724_p12 }
 0x389   : > { %p1722_p2 = pneg %p1721_p8 }
 0x38a   : > { %p1728_p6 = por %p1727_p13, %p1726_p7 }
 0x38c   : > { %p1729_p10 = pnand %p1728_p6, %p1722_p2 }
 0x38e   : > { %1732 = shalt.err (!%p1729_p10)
}
 0x38f   : > { %s1807_s8 = smov 64   ;;  %s1808_s10 = smov 4  }
 0x390   : > { %1465 = dma.vmem_to_hbm [thread:$0]  (%p2006_p3), %s2242_s14, 1024, %s2240_s16, %s1088_s7, %s1807_s8, %s1807_s8, %s1808_s10  }
 0x391 PF: > { %s2332_s24 = sld [smem:[#allocation15_spill]]  ;;  %s2333_s23 = sld [smem:[#allocation16_spill]] }
 0x392   : > { %p2335_p5 = scmp.ge.s32.totalorder %s1795_s29, 2 }
 0x397   : > { %s1118_s27 = sand.u32 1, %s2332_s24   ;;  %p2334_p11 = scmp.ne.s32.totalorder %s2333_s23, 0 }
 0x398   : > { %s1119_s9 = scalar_lea.sflag [#allocation4], %s1118_s27 }
 0x399   : > { %p1482_p9 = pnand %p2335_p5, %p2334_p11 }
 0x39b   : > { %1770 = dma.done.wait (!%p1482_p9), %s1119_s9, 1024  }
 0x39c   : > { %1772 = vsyncadd (!%p1482_p9), %s1119_s9, 4294966272  ;;  %s25_s29 = sadd.s32 1, %s1795_s29   ;;  %s2336_s24 = smov %s1779_s25 }
 0x39d   : > { %p22_p0 = scmp.ge.s32.totalorder %s25_s29, 4   ;;  %s2337_s25 = smov %s1783_s26 }
 0x39e   : > { %s2338_s26 = smov %s2015_s22  ;;  %s2339_s27 = smov %s1791_s28 }
 0x39f   : > { %s2340_s28 = smov %s2342_s1  ;;  %24 = sbr.rel (!%p22_p0) target bundleno = 11 (0xb), region = 105 }
 0x3a6   :  { %1124 = vsyncpa [#allocation3], 1 }
 0x3a7   :  { %1126 = vsyncpa [#allocation3 + $0x1], 1 }
 0x3a8   :  { %1127 = vsyncpa [#allocation6], 1 }
 0x3a9   :  { %1128 = vsyncpa [#allocation9], 1 }
 0x3aa   :  { %1129 = vsyncpa [#allocation4], 1 }
 0x3ab   :  { %1131 = vsyncpa [#allocation4 + $0x1], 1 }

</bundles_post_ra>
